<compile_context>
chip_gen: v6e
topology: v6e:2x2x1
jax: 0.10.0
libtpu: 0.0.40
codegen_flags: <defaults>
</compile_context>

<pallas_src>
import jax
import jax.numpy as jnp
from jax.experimental import pallas as pl
from jax.experimental.pallas import tpu as pltpu


def _uncertainty_kernel(loss_ref, param_ref, out_ref):
    # loss_ref  : (1, num) per-task losses in VMEM (any float dtype; widened in-kernel).
    # param_ref : (1, num) learnable weights in VMEM.
    # out_ref   : (1, 1)  f32 scalar output in SMEM (rides the sreg/SMEM path, no padded
    #             VMEM tile writeback).
    l = loss_ref[...].astype(jnp.float32)            # (1, num)
    p = param_ref[...].astype(jnp.float32)           # (1, num)
    p2 = p * p
    inv_p2 = pl.reciprocal(p2, approx=False)         # exact: EUP estimate + VALU Newton
    # log(1 + p^2) matches torch.log(1 + params[i]**2) in the reference module.
    terms = 0.5 * l * inv_p2 + jnp.log(1.0 + p2)     # (1, num)
    out_ref[0, 0] = jnp.sum(terms)                   # cross-lane reduce -> scalar -> SMEM


def uncertainty_positive(losses: jax.Array, params: jax.Array) -> jax.Array:
    """losses: (num,) per-task scalar losses; params: (num,) learnable weights.

    Returns a scalar f32 equal to the PyTorch module's forward output.
    """
    num = losses.shape[0]
    # Reshape to (1, num) is a free metadata change (num stays on the lane axis).
    # NOTE: if num ever grows to thousands of tasks, fold the data so all 8 sublanes of
    # each vreg are used before the XLU reduce; irrelevant at num=2.
    losses_2d = losses.reshape(1, num)
    params_2d = params.reshape(1, num)

    out = pl.pallas_call(
        _uncertainty_kernel,
        out_shape=jax.ShapeDtypeStruct((1, 1), jnp.float32),
        in_specs=[
            pl.BlockSpec(memory_space=pltpu.VMEM),   # whole array, no grid
            pl.BlockSpec(memory_space=pltpu.VMEM),
        ],
        out_specs=pl.BlockSpec(memory_space=pltpu.SMEM),
    )(losses_2d, params_2d)
    return out[0, 0]


if __name__ == "__main__":
    num = 2  # default in the module's __init__

    # Deterministic parameter init, matching torch.ones(num) in __init__.
    params = jnp.ones((num,), dtype=jnp.float32)

    # Deterministic example per-task losses (positive scalars).
    key = jax.random.PRNGKey(0)
    losses = jax.random.uniform(key, (num,), dtype=jnp.float32, minval=0.5, maxval=2.0)

    result = uncertainty_positive(losses, params)
    result = jax.block_until_ready(result)

    # Pure-JAX reference check of the same formula.
    ref = jnp.sum(0.5 / params**2 * losses + jnp.log(1.0 + params**2))
    assert jnp.allclose(result, ref, rtol=1e-6, atol=1e-6), (result, ref)

    print("KERNEL_OK")
</pallas_src>

<mosaic_0001>
module attributes {stable_mosaic.version = 11 : i64} {
  func.func @_uncertainty_kernel(%arg0: memref<1x2xf32, #tpu.memory_space<vmem>>, %arg1: memref<1x2xf32, #tpu.memory_space<vmem>>, %arg2: memref<1x1xf32, #tpu.memory_space<smem>>) attributes {dimension_semantics = [], scalar_prefetch = 0 : i64, scratch_operands = 0 : i64, tpu.core_type = #tpu.core_type<tc>} {
    %c0 = arith.constant 0 : index
    %c0_0 = arith.constant 0 : index
    %0 = vector.load %arg0[%c0, %c0_0] : memref<1x2xf32, #tpu.memory_space<vmem>>, vector<1x2xf32>
    %c0_1 = arith.constant 0 : index
    %c0_2 = arith.constant 0 : index
    %1 = vector.load %arg1[%c0_1, %c0_2] : memref<1x2xf32, #tpu.memory_space<vmem>>, vector<1x2xf32>
    %2 = arith.mulf %1, %1 : vector<1x2xf32>
    %3 = tpu.reciprocal %2 : vector<1x2xf32> -> vector<1x2xf32>
    %cst = arith.constant 5.000000e-01 : f32
    %4 = vector.broadcast %cst : f32 to vector<1x2xf32>
    %5 = arith.mulf %4, %0 : vector<1x2xf32>
    %6 = arith.mulf %5, %3 : vector<1x2xf32>
    %cst_3 = arith.constant 1.000000e+00 : f32
    %7 = vector.broadcast %cst_3 : f32 to vector<1x2xf32>
    %8 = arith.addf %7, %2 : vector<1x2xf32>
    %9 = math.log %8 : vector<1x2xf32>
    %10 = arith.addf %6, %9 : vector<1x2xf32>
    %11 = vector.shape_cast %10 : vector<1x2xf32> to vector<1x1x2xf32>
    %cst_4 = arith.constant dense<0.000000e+00> : vector<1xf32>
    %12 = vector.multi_reduction <add>, %11, %cst_4 [1, 2] : vector<1x1x2xf32> to vector<1xf32>
    %13 = vector.shape_cast %12 : vector<1xf32> to vector<1x1x1xf32>
    %14 = vector.extract %13[0, 0, 0] : f32 from vector<1x1x1xf32>
    %c0_5 = arith.constant 0 : index
    %c0_6 = arith.constant 0 : index
    %15 = memref.load %arg2[%c0_5, %c0_6] : memref<1x1xf32, #tpu.memory_space<smem>>
    memref.store %14, %arg2[%c0_5, %c0_6] : memref<1x1xf32, #tpu.memory_space<smem>>
    return
  }
}

</mosaic_0001>

<bundles_post_ra>
// kernel: tpu_custom_call.1
= control target key start
LH: loop header
LB: loop body
LE: loop exit
PB: predicated region body
PF: predicated region fallthrough
CT: control target
= control target key end

     0   :  { %7 = vsyncpa [#allocation3], 0  ;;  %s127_s0 = inlined_call_operand.hbm [shape: f32[1,2], index: 0, kind: input, shape index: {}]   ;;  %s128_s1 = inlined_call_operand.vmem [shape: f32[1,2], index: 1, kind: input, shape index: {}]   ;;  %s129_s2 = inlined_call_operand.hbm [shape: f32[1,1], index: 2, kind: output, shape index: {}]  }
   0x1   :  { %8 = vsyncpa [#allocation4], 0  ;;  %s101_s9 = smov [#allocation2]  }
   0x2   :  { %s15_s10 = sshll.u32 %s101_s9, 4  ;;  %s16_s10 = int_to_ptr.vmem [resolvable:$true] %s15_s10 }
   0x3   :  { %s77_s11 = scalar_lea.vmem %s16_s10, 16  ;;  %s81_s12 = scalar_lea.vmem %s16_s10, 32 }
   0x4   :  { %p78_p0 = scmp.ne.s32.totalorder %s16_s10, %s77_s11  ;;  %p82_p1 = scmp.lt.s32.totalorder %s16_s10, %s16_s10 }
   0x5   :  { %p83_p2 = scmp.lt.s32.totalorder %s81_s12, %s77_s11 }
   0x7   :  { %p84_p3 = por %p83_p2, %p82_p1 }
   0x9   :  { %p85_p4 = pnand %p84_p3, %p78_p0 }
   0xb   :  { %88 = shalt.err (!%p85_p4)
}
   0xc   :  { %18 = dma.hbm_to_vmem [thread:$0]  %s127_s0, 16, %s16_s10, [#allocation3]  }
   0xd   :  { %97 = dma.done.wait [#allocation3], 16  }
   0xe   :  { %98 = vsyncadd [#allocation3], 4294967280  ;;  %v25_v0 = vld [vmem:[%s128_s1] sm:$0x1]  ;;  %vm34_vm0 = vcmask 8192   ;;  %s102_s1 = smov [#allocation5]  }
   0xf   :  { %v26_v1 = vmul.f32 %v25_v0, %v25_v0  ;;  %v24_v3 = vld [vmem:[#allocation2] sm:$0x1] }
  0x10   :  { %v28_v4 = vmul.f32 0.5, %v24_v3 }
  0x11   :  { %65 = vrcp.f32 %v26_v1  ;;  %v30_v2 = vadd.f32 1.0, %v26_v1 }
  0x13   :  { %67 = vlog2.f32 %v30_v2 }
  0x1e   :  { %v66_v5 = vpop.eup %65 }
  0x1f   :  { %v29_v6 = vmul.f32 %v66_v5, %v28_v4 }
  0x20   :  { %v68_v7 = vpop.eup %67 }
  0x21   :  { %v32_v8 = vmul.f32 0.6931472, %v68_v7 }
  0x23   :  { %v33_v9 = vadd.f32 %v32_v8, %v29_v6 }
  0x25   :  { %v35_v10 = vsel %vm34_vm0, %v33_v9, 0.0 }
  0x26   :  { %36 = vadd.xlane.f32.xlu0 %v35_v10 }
  0xaf   :  { %v37_v11 = vpop.xlane.xlu0 %36 }
  0xb0   :  { %v38_v12 = vrot.slane %v37_v11, 4 }
  0xb2   :  { %v39_v13 = vadd.f32 %v38_v12, %v37_v11 }
  0xb4   :  { %v40_v14 = vrot.slane %v39_v13, 2 }
  0xb6   :  { %v41_v15 = vadd.f32 %v40_v14, %v39_v13 }
  0xb8   :  { %v42_v16 = vrot.slane %v41_v15, 1 }
  0xba   :  { %v43_v17 = vadd.f32 %v42_v16, %v41_v15 }
  0xbc   :  { %61 = vpush %v43_v17 }
  0xed   :  { %s62_s0 = spop %61 }
  0xee   :  { %46 = sst [smem:[#allocation5]] %s62_s0 }
  0xef   :  { %54 = dma.smem_to_hbm %s102_s1, 16, %s129_s2, [#allocation4]  }
  0xf0   :  { %99 = dma.done.wait [#allocation4], 16  }
  0xf1   :  { %100 = vsyncadd [#allocation4], 4294967280 }
  0xf2   :  { %58 = sfence }
  0xf3   :  { %59 = vsyncpa [#allocation3], 1 }
  0xf4   :  { %60 = vsyncpa [#allocation4], 1 }

</bundles_post_ra>
